<compile_context>
chip_gen: v7x
topology: tpu7x:2x2x1
jax: 0.10.0
libtpu: 0.0.40
codegen_flags: <defaults>
</compile_context>

<pallas_src>
import functools

import jax
import jax.numpy as jnp
from jax import lax
from jax.experimental import pallas as pl
from jax.experimental.pallas import tpu as pltpu

LANE = 128


def _focal_kernel(x_ref, y_ref, o_ref, *, alpha, gamma, rows, tm, chunk, nblocks):
    pid = pl.program_id(0)

    @pl.when(pid == 0)
    def _init():
        o_ref[...] = jnp.zeros_like(o_ref)

    na = jnp.float32(-alpha)          # -(alpha)
    nb = jnp.float32(alpha - 1.0)     # -(1 - alpha)

    def chunk_loss(xr, yr):
        x = xr.astype(jnp.float32)
        y = yr.astype(jnp.float32)
        t = jnp.exp(-jnp.abs(x))              # exp(-|x|), in (0, 1]
        s = 1.0 + t
        l = jnp.log1p(t)                      # log(1 + exp(-|x|))
        log_p = jnp.minimum(x, 0.0) - l       # log(sigmoid(x))
        log_1mp = log_p - x                   # log(1 - sigmoid(x))
        # sigmoid(x) via EUP approx reciprocal + 2 Newton steps (full f32
        # accuracy, cheaper than an f32 divide sequence).
        r = pl.reciprocal(s, approx=True)
        r = r * (2.0 - s * r)
        r = r * (2.0 - s * r)
        p = jnp.where(x >= 0.0, r, t * r)     # sigmoid(x)
        d = y - p
        if gamma == 2.0:
            g = d * d                         # avoid pow / 0**0 issues
        else:
            g = jnp.power(jnp.abs(d), jnp.float32(gamma))  # requires gamma > 0
        # loss = -|y - p|^gamma * (alpha*y*log_p + (1-alpha)*(1-y)*log_1mp)
        return ((na * y) * log_p + (nb * (1.0 - y)) * log_1mp) * g

    def accumulate(loss):
        c = loss.shape[0]
        o_ref[...] += jnp.sum(loss.reshape(c // 8, 8, LANE), axis=0)

    def full_block():
        @pl.loop(0, tm // chunk)
        def _body(ci):
            r0 = pl.multiple_of(ci * chunk, chunk)
            accumulate(chunk_loss(x_ref[pl.ds(r0, chunk), :],
                                  y_ref[pl.ds(r0, chunk), :]))

    last_rows = rows - (nblocks - 1) * tm      # static, in (0, tm]

    if last_rows == tm:
        # Every block (including the last one) is full: no masking anywhere.
        full_block()
    else:
        if nblocks > 1:
            pl.when(pid < nblocks - 1)(full_block)

        @pl.when(pid == nblocks - 1)
        def _tail_block():
            # Only valid rows of the last (partial) block are visited; rows
            # >= last_rows are uninitialized VMEM, so the single straddling
            # chunk gets a (static-limit) row mask and trailing chunks are
            # skipped entirely.
            for ci in range(pl.cdiv(last_rows, chunk)):
                r0 = ci * chunk
                nvalid = min(chunk, last_rows - r0)
                loss = chunk_loss(x_ref[pl.ds(r0, chunk), :],
                                  y_ref[pl.ds(r0, chunk), :])
                if nvalid < chunk:
                    rid = lax.broadcasted_iota(jnp.int32, (chunk, LANE), 0)
                    loss = jnp.where(rid < nvalid, loss, 0.0)
                accumulate(loss)


def _min_sublanes(*dtypes):
    itemsize = min(jnp.dtype(d).itemsize for d in dtypes)
    return {4: 8, 2: 16, 1: 32}.get(itemsize, 8)


def focal_loss_v3(logits, labels, alpha=0.25, gamma=2.0, *, tm=8192, chunk=512):
    """Mean sigmoid focal loss over all elements (FocalLossV3 forward)."""
    n = logits.size
    x = logits.reshape(-1)
    y = labels.reshape(-1)

    rem = n % LANE
    if rem:
        # Rare: numel not a multiple of 128.  Pad the flat arrays (one copy)
        # with zero-loss values: logits -> -100 (sigmoid ~ 0), labels -> 0.
        # TODO(synk): handle the sub-lane tail with 1-D blocks to avoid this copy.
        pad = LANE - rem
        x = jnp.pad(x, (0, pad), constant_values=-100.0)
        y = jnp.pad(y, (0, pad), constant_values=0)

    rows = x.shape[0] // LANE
    x2 = x.reshape(rows, LANE)        # free reshape: no HBM copy
    y2 = y.reshape(rows, LANE)

    # Row-block (tm) and compute-chunk sizes: honour the dtype min sublane
    # tile (8 f32 / 16 bf16 / 32 int8), clamp to the array, keep tm % chunk == 0.
    ms = _min_sublanes(x2.dtype, y2.dtype)
    tm = max(ms, min(int(tm), pl.cdiv(rows, ms) * ms))
    chunk = max(ms, min(int(chunk), tm))
    chunk = (chunk // ms) * ms
    tm = max(chunk, (tm // chunk) * chunk)
    nblocks = pl.cdiv(rows, tm)

    # Double-buffered input DMA + chunked f32 temporaries + margin.
    needed = (2 * tm * LANE * (x2.dtype.itemsize + y2.dtype.itemsize)
              + 16 * chunk * LANE * 4 + (4 << 20))
    vmem_limit = int(min(max(needed, 32 << 20), 64 << 20))

    kernel = functools.partial(
        _focal_kernel, alpha=float(alpha), gamma=float(gamma),
        rows=rows, tm=tm, chunk=chunk, nblocks=nblocks)

    partial_sums = pl.pallas_call(
        kernel,
        out_shape=jax.ShapeDtypeStruct((8, LANE), jnp.float32),
        grid_spec=pltpu.PrefetchScalarGridSpec(
            num_scalar_prefetch=0,
            grid=(nblocks,),
            in_specs=[pl.BlockSpec((tm, LANE), lambda i: (i, 0)),
                      pl.BlockSpec((tm, LANE), lambda i: (i, 0))],
            out_specs=pl.BlockSpec((8, LANE), lambda i: (0, 0)),
        ),
        compiler_params=pltpu.CompilerParams(
            dimension_semantics=("arbitrary",),
            vmem_limit_bytes=vmem_limit),
    )(x2, y2)

    # Tiny final reduce + mean (reduction='mean') outside the kernel.
    return jnp.sum(partial_sums) / jnp.float32(n)


def _reference_focal_loss(logits, labels, alpha=0.25, gamma=2.0):
    x = logits.astype(jnp.float32)
    y = labels.astype(jnp.float32)
    p = jax.nn.sigmoid(x)
    coeff = -jnp.power(jnp.abs(y - p), gamma)
    log_p = jax.nn.log_sigmoid(x)
    log_1p = jax.nn.log_sigmoid(-x)
    loss = (y * alpha * log_p + (1.0 - y) * (1.0 - alpha) * log_1p) * coeff
    return jnp.mean(loss)


if __name__ == "__main__":
    key = jax.random.PRNGKey(0)
    k1, k2 = jax.random.split(key)

    # Small NCHW logits + same-shape binary labels (sigmoid focal loss convention).
    logits = jax.random.normal(k1, (2, 4, 16, 16), dtype=jnp.float32)
    labels = jax.random.bernoulli(k2, 0.3, (2, 4, 16, 16)).astype(jnp.float32)

    loss = focal_loss_v3(logits, labels, alpha=0.25, gamma=2.0)
    jax.block_until_ready(loss)

    ref = _reference_focal_loss(logits, labels, alpha=0.25, gamma=2.0)
    assert jnp.allclose(loss, ref, rtol=1e-5, atol=1e-6), (loss, ref)

    print("KERNEL_OK")
</pallas_src>

<mosaic_0001>
module attributes {stable_mosaic.version = 11 : i64} {
  func.func @_focal_kernel(%arg0: i32, %arg1: memref<16x128xf32, #tpu.memory_space<vmem>>, %arg2: memref<16x128xf32, #tpu.memory_space<vmem>>, %arg3: memref<8x128xf32, #tpu.memory_space<vmem>>) attributes {dimension_semantics = [#tpu.dimension_semantics<arbitrary>], iteration_bounds = array<i64: 1>, scalar_prefetch = 0 : i64, scratch_operands = 0 : i64, tpu.core_type = #tpu.core_type<tc>, window_params = [{transform_indices = @transform_0, window_bounds = array<i64: 16, 128>}, {transform_indices = @transform_1, window_bounds = array<i64: 16, 128>}, {pipeline_mode = #tpu.pipeline_mode<synchronous>, transform_indices = @transform_2, window_bounds = array<i64: 8, 128>}]} {
    %c0_i32 = arith.constant 0 : i32
    %0 = arith.cmpi eq, %arg0, %c0_i32 : i32
    %1 = arith.extui %0 : i1 to i32
    %c0_i32_0 = arith.constant 0 : i32
    %2 = arith.cmpi ne, %1, %c0_i32_0 : i32
    scf.if %2 {
      %cst_18 = arith.constant 0.000000e+00 : f32
      %52 = vector.broadcast %cst_18 : f32 to vector<8x128xf32>
      %c0_19 = arith.constant 0 : index
      %c0_20 = arith.constant 0 : index
      %53 = vector.load %arg3[%c0_19, %c0_20] : memref<8x128xf32, #tpu.memory_space<vmem>>, vector<8x128xf32>
      tpu.vector_store %arg3[%c0_19, %c0_20], %52 {strides = array<i32>} : memref<8x128xf32, #tpu.memory_space<vmem>>, vector<8x128xf32>,
    } else {
    }
    %cst = arith.constant -2.500000e-01 : f32
    %cst_1 = arith.constant -7.500000e-01 : f32
    %c0_i32_2 = arith.constant 0 : i32
    %c1_i32 = arith.constant 1 : i32
    %3 = arith.muli %c0_i32_2, %c1_i32 : i32
    %c0_i32_3 = arith.constant 0 : i32
    %4 = arith.addi %c0_i32_3, %3 : i32
    %c16_i32 = arith.constant 16 : i32
    %5 = arith.muli %4, %c16_i32 : i32
    %6 = tpu.assume_multiple %5, 16 : i32
    %7 = arith.index_cast %6 : i32 to index
    %c0 = arith.constant 0 : index
    %8 = vector.load %arg1[%7, %c0] : memref<16x128xf32, #tpu.memory_space<vmem>>, vector<16x128xf32>
    %9 = arith.index_cast %6 : i32 to index
    %c0_4 = arith.constant 0 : index
    %10 = vector.load %arg2[%9, %c0_4] : memref<16x128xf32, #tpu.memory_space<vmem>>, vector<16x128xf32>
    %11 = math.absf %8 : vector<16x128xf32>
    %cst_5 = arith.constant 0.000000e+00 : f32
    %12 = vector.broadcast %cst_5 : f32 to vector<16x128xf32>
    %13 = arith.subf %12, %11 : vector<16x128xf32>
    %14 = math.exp %13 : vector<16x128xf32>
    %cst_6 = arith.constant 1.000000e+00 : f32
    %15 = vector.broadcast %cst_6 : f32 to vector<16x128xf32>
    %16 = arith.addf %15, %14 : vector<16x128xf32>
    %17 = math.log1p %14 : vector<16x128xf32>
    %cst_7 = arith.constant 0.000000e+00 : f32
    %18 = vector.broadcast %cst_7 : f32 to vector<16x128xf32>
    %19 = arith.minimumf %8, %18 : vector<16x128xf32>
    %20 = arith.subf %19, %17 : vector<16x128xf32>
    %21 = arith.subf %20, %8 : vector<16x128xf32>
    %22 = tpu.reciprocal %16 {approx = true} : vector<16x128xf32> -> vector<16x128xf32>
    %23 = arith.mulf %16, %22 : vector<16x128xf32>
    %cst_8 = arith.constant 2.000000e+00 : f32
    %24 = vector.broadcast %cst_8 : f32 to vector<16x128xf32>
    %25 = arith.subf %24, %23 : vector<16x128xf32>
    %26 = arith.mulf %22, %25 : vector<16x128xf32>
    %27 = arith.mulf %16, %26 : vector<16x128xf32>
    %cst_9 = arith.constant 2.000000e+00 : f32
    %28 = vector.broadcast %cst_9 : f32 to vector<16x128xf32>
    %29 = arith.subf %28, %27 : vector<16x128xf32>
    %30 = arith.mulf %26, %29 : vector<16x128xf32>
    %cst_10 = arith.constant 0.000000e+00 : f32
    %31 = vector.broadcast %cst_10 : f32 to vector<16x128xf32>
    %32 = arith.cmpf oge, %8, %31 : vector<16x128xf32>
    %33 = arith.mulf %14, %30 : vector<16x128xf32>
    %34 = arith.select %32, %30, %33 : vector<16x128xi1>, vector<16x128xf32>
    %35 = arith.subf %10, %34 : vector<16x128xf32>
    %36 = arith.mulf %35, %35 : vector<16x128xf32>
    %37 = vector.broadcast %cst : f32 to vector<16x128xf32>
    %38 = arith.mulf %37, %10 : vector<16x128xf32>
    %39 = arith.mulf %38, %20 : vector<16x128xf32>
    %cst_11 = arith.constant 1.000000e+00 : f32
    %40 = vector.broadcast %cst_11 : f32 to vector<16x128xf32>
    %41 = arith.subf %40, %10 : vector<16x128xf32>
    %42 = vector.broadcast %cst_1 : f32 to vector<16x128xf32>
    %43 = arith.mulf %42, %41 : vector<16x128xf32>
    %44 = arith.mulf %43, %21 : vector<16x128xf32>
    %45 = arith.addf %39, %44 : vector<16x128xf32>
    %46 = arith.mulf %45, %36 : vector<16x128xf32>
    %c0_12 = arith.constant 0 : index
    %c0_13 = arith.constant 0 : index
    %47 = vector.load %arg3[%c0_12, %c0_13] : memref<8x128xf32, #tpu.memory_space<vmem>>, vector<8x128xf32>
    %48 = vector.shape_cast %46 : vector<16x128xf32> to vector<2x8x128xf32>
    %cst_14 = arith.constant dense<0.000000e+00> : vector<8x128xf32>
    %49 = vector.multi_reduction <add>, %48, %cst_14 [0] : vector<2x8x128xf32> to vector<8x128xf32>
    %50 = arith.addf %47, %49 : vector<8x128xf32>
    %c0_15 = arith.constant 0 : index
    %c0_16 = arith.constant 0 : index
    %51 = vector.load %arg3[%c0_15, %c0_16] : memref<8x128xf32, #tpu.memory_space<vmem>>, vector<8x128xf32>
    tpu.vector_store %arg3[%c0_15, %c0_16], %50 {strides = array<i32>} : memref<8x128xf32, #tpu.memory_space<vmem>>, vector<8x128xf32>,
    %c1_i32_17 = arith.constant 1 : i32
    return
  }
  func.func @transform_0(%arg0: i32) -> (i32, i32) {
    %c0_i32 = arith.constant 0 : i32
    %c0_i32_0 = arith.constant 0 : i32
    return %arg0, %c0_i32 : i32, i32
  }
  func.func @transform_1(%arg0: i32) -> (i32, i32) {
    %c0_i32 = arith.constant 0 : i32
    %c0_i32_0 = arith.constant 0 : i32
    return %arg0, %c0_i32 : i32, i32
  }
  func.func @transform_2(%arg0: i32) -> (i32, i32) {
    %c0_i32 = arith.constant 0 : i32
    %c0_i32_0 = arith.constant 0 : i32
    %c0_i32_1 = arith.constant 0 : i32
    return %c0_i32, %c0_i32_0 : i32, i32
  }
}

</mosaic_0001>

<bundles_post_ra>
// kernel: tpu_custom_call.1
= control target key start
LH: loop header
LB: loop body
LE: loop exit
PB: predicated region body
PF: predicated region fallthrough
CT: control target
= control target key end

     0   :  { %7 = vsyncpa [#allocation3], 0  ;;  %s311_s0 = inlined_call_operand.hbm [shape: f32[16,128], index: 0, kind: input, shape index: {}]   ;;  %s312_s1 = inlined_call_operand.hbm [shape: f32[16,128], index: 1, kind: input, shape index: {}]   ;;  %s313_s2 = inlined_call_operand.hbm [shape: f32[8,128], index: 2, kind: output, shape index: {}]  }
   0x1   :  { %8 = vsyncpa [#allocation6], 0 }
   0x2   :  { %9 = vsyncpa [#allocation4], 0  ;;  %s231_s9 = smov [#allocation2]   ;;  %s159_s13 = scalar_lea.hbm %s311_s0, 256 }
   0x3   :  { %s15_s10 = sshll.u32 %s231_s9, 4  ;;  %p160_p0 = scmp.ne.s32.totalorder %s311_s0, %s159_s13  ;;  %s16_s10 = int_to_ptr.vmem [resolvable:$true] %s15_s10 }
   0x4   :  { %p163_p1 = scmp.lt.u32.totalorder %s159_s13, %s311_s0 }
   0x6   :  { %p165_p2 = pnand %p163_p1, %p160_p0 }
   0x8   :  { %168 = shalt.err (!%p165_p2)
}
   0x9   :  { %s169_s18 = scalar_lea.vmem %s16_s10, 256  ;;  %p174_p4 = scmp.lt.s32.totalorder %s16_s10, %s16_s10 }
   0xa   :  { %p170_p3 = scmp.ne.s32.totalorder %s16_s10, %s169_s18  ;;  %p175_p5 = scmp.lt.s32.totalorder %s169_s18, %s169_s18 }
   0xc   :  { %p176_p6 = por %p175_p5, %p174_p4 }
   0xe   :  { %p177_p7 = pnand %p176_p6, %p170_p3 }
  0x10   :  { %180 = shalt.err (!%p177_p7)
}
  0x11   :  { %s232_s19 = smov 128   ;;  %s233_s20 = smov 8  }
  0x12   :  { %21 = dma.hbm_to_vmem [thread:$0]  %s311_s0, 256, %s16_s10, [#allocation3], %s232_s19, %s232_s19, %s233_s20  }
  0x13   :  { %s234_s23 = smov [#allocation5]   ;;  %s181_s27 = scalar_lea.hbm %s312_s1, 256 }
  0x14   :  { %s27_s24 = sshll.u32 %s234_s23, 4  ;;  %p182_p8 = scmp.ne.s32.totalorder %s312_s1, %s181_s27  ;;  %s28_s24 = int_to_ptr.vmem [resolvable:$true] %s27_s24 }
  0x15   :  { %p185_p9 = scmp.lt.u32.totalorder %s181_s27, %s312_s1 }
  0x17   :  { %p187_p10 = pnand %p185_p9, %p182_p8 }
  0x19   :  { %190 = shalt.err (!%p187_p10)
}
  0x1a   :  { %s191_s4 = scalar_lea.vmem %s28_s24, 256  ;;  %p196_p12 = scmp.lt.s32.totalorder %s28_s24, %s28_s24 }
  0x1b   :  { %p192_p11 = scmp.ne.s32.totalorder %s28_s24, %s191_s4  ;;  %p197_p13 = scmp.lt.s32.totalorder %s191_s4, %s191_s4 }
  0x1d   :  { %p198_p0 = por %p197_p13, %p196_p12 }
  0x1f   :  { %p199_p1 = pnand %p198_p0, %p192_p11 }
  0x21   :  { %202 = shalt.err (!%p199_p1)
}
  0x22   :  { %33 = dma.hbm_to_vmem [thread:$0]  %s312_s1, 256, %s28_s24, [#allocation6], %s232_s19, %s232_s19, %s233_s20  }
  0x23   :  { %225 = dma.done.wait [#allocation3], 256  }
  0x24   :  { %226 = vsyncadd [#allocation3], 4294967040 }
  0x25   :  { %227 = dma.done.wait [#allocation6], 256  }
  0x26   :  { %228 = vsyncadd [#allocation6], 4294967040  ;;  %v275_v0 = vld [vmem:[#allocation2] sm:$0xff]  ;;  %v277_v1 = vld [vmem:[#allocation2 + $0x8] sm:$0xff]  ;;  %s235_s1 = smov [#allocation7]  }
  0x27   :  { %v49_v2 = vand.u32 2147483647, %v275_v0  ;;  %v50_v3 = vand.u32 2147483647, %v277_v1  ;;  %v77_v27 = vmin.f32 %v275_v0, 0.0  ;;  %v47_v29 = vld [vmem:[#allocation5] sm:$0xff] }
  0x28   :  { %v78_v31 = vmin.f32 %v277_v1, 0.0  ;;  %v48_v33 = vld [vmem:[#allocation5 + $0x8] sm:$0xff]  ;;  %v111_v39 = vsub.f32 1.0, %v47_v29  ;;  %v107_v47 = vmul.f32 -0.25, %v47_v29  ;;  %vm97_vm2 = vcmp.ge.f32.partialorder %v275_v0, 0.0  ;;  %s131_s6 = sshll.u32 %s235_s1, 4  ;;  %s132_s6 = int_to_ptr.vmem [resolvable:$true] %s131_s6 }
  0x29   :  { %v51_v4 = vsub.f32 0.0, %v49_v2  ;;  %v52_v5 = vsub.f32 0.0, %v50_v3  ;;  %v112_v42 = vsub.f32 1.0, %v48_v33  ;;  %v108_v51 = vmul.f32 -0.25, %v48_v33  ;;  %s203_s7 = scalar_lea.vmem %s132_s6, 128  ;;  %p208_p3 = scmp.lt.s32.totalorder %s132_s6, %s132_s6 }
  0x2a   :  { %v113_v48 = vmul.f32 -0.75, %v111_v39  ;;  %vm98_vm3 = vcmp.ge.f32.partialorder %v277_v1, 0.0  ;;  %p204_p2 = scmp.ne.s32.totalorder %s132_s6, %s203_s7  ;;  %p209_p4 = scmp.lt.s32.totalorder %s203_s7, %s203_s7 }
  0x2b   :  { %v53_v6 = vmul.f32 1.442695, %v51_v4  ;;  %v55_v7 = vmul.f32 1.442695, %v52_v5  ;;  %v114_v52 = vmul.f32 -0.75, %v112_v42 }
  0x2c   :  { %p210_p5 = por %p209_p4, %p208_p3 }
  0x2d   :  { %147 = vpow2.f32 %v53_v6 }
  0x2e   :  { %149 = vpow2.f32 %v55_v7  ;;  %p211_p6 = pnand %p210_p5, %p204_p2 }
  0x37   :  { %v148_v8 = vpop.eup %147 }
  0x38   :  { %v150_v9 = vpop.eup %149  ;;  %v57_v10 = vadd.f32 1.0, %v148_v8  ;;  %v62_v12 = vmul.f32 -0.5, %v148_v8  ;;  %v65_v15 = vand.u32 2147483647, %v148_v8 }
  0x39   :  { %v58_v11 = vadd.f32 1.0, %v150_v9  ;;  %v71_v13 = vmul.f32 -0.5, %v150_v9  ;;  %v74_v17 = vand.u32 2147483647, %v150_v9 }
  0x3a   :  { %151 = vlog2.f32 %v57_v10  ;;  %v63_v14 = vadd.f32 1.0, %v62_v12  ;;  %vm281_vm0 = vcmp.lt.f32.partialorder %v65_v15, 0.0004427343 }
  0x3b   :  { %153 = vlog2.f32 %v58_v11  ;;  %v72_v16 = vadd.f32 1.0, %v71_v13  ;;  %vm285_vm1 = vcmp.lt.f32.partialorder %v74_v17, 0.0004427343 }
  0x3c   :  { %155 = vrcp.f32 %v57_v10  ;;  %v64_v18 = vmul.f32 %v148_v8, %v63_v14 }
  0x3d   :  { %157 = vrcp.f32 %v58_v11  ;;  %v73_v21 = vmul.f32 %v150_v9, %v72_v16 }
  0x44   :  { %v152_v19 = vpop.eup %151 }
  0x45   :  { %v154_v22 = vpop.eup %153  ;;  %v61_v23 = vmul.f32 0.6931472, %v152_v19 }
  0x46   :  { %v156_v25 = vpop.eup %155  ;;  %v70_v26 = vmul.f32 0.6931472, %v154_v22 }
  0x47   :  { %v158_v28 = vpop.eup %157  ;;  %v67_v30 = vsel %vm281_vm0, %v64_v18, %v61_v23  ;;  %v85_v32 = vmul.f32 %v156_v25, %v57_v10 }
  0x48   :  { %v76_v34 = vsel %vm285_vm1, %v73_v21, %v70_v26  ;;  %v86_v35 = vmul.f32 %v158_v28, %v58_v11  ;;  %v79_v37 = vsub.f32 %v77_v27, %v67_v30 }
  0x49   :  { %v87_v36 = vsub.f32 2.0, %v85_v32  ;;  %v80_v40 = vsub.f32 %v78_v31, %v76_v34 }
  0x4a   :  { %v88_v38 = vsub.f32 2.0, %v86_v35  ;;  %v81_v45 = vsub.f32 %v79_v37, %v275_v0  ;;  %v109_v56 = vmul.f32 %v107_v47, %v79_v37 }
  0x4b   :  { %v89_v41 = vmul.f32 %v156_v25, %v87_v36  ;;  %v82_v49 = vsub.f32 %v80_v40, %v277_v1  ;;  %v110_v59 = vmul.f32 %v108_v51, %v80_v40 }
  0x4c   :  { %v90_v43 = vmul.f32 %v158_v28, %v88_v38  ;;  %v115_v57 = vmul.f32 %v113_v48, %v81_v45 }
  0x4d   :  { %v91_v44 = vmul.f32 %v89_v41, %v57_v10  ;;  %v116_v60 = vmul.f32 %v114_v52, %v82_v49 }
  0x4e   :  { %v92_v46 = vmul.f32 %v90_v43, %v58_v11  ;;  %v117_v3 = vadd.f32 %v115_v57, %v109_v56 }
  0x4f   :  { %v93_v50 = vsub.f32 2.0, %v91_v44  ;;  %v118_v5 = vadd.f32 %v116_v60, %v110_v59 }
  0x50   :  { %v94_v53 = vsub.f32 2.0, %v92_v46 }
  0x51   :  { %v95_v54 = vmul.f32 %v93_v50, %v89_v41 }
  0x52   :  { %v96_v55 = vmul.f32 %v94_v53, %v90_v43 }
  0x53   :  { %v99_v58 = vmul.f32 %v148_v8, %v95_v54 }
  0x54   :  { %v100_v61 = vmul.f32 %v150_v9, %v96_v55 }
  0x55   :  { %v101_v62 = vsel %vm97_vm2, %v95_v54, %v99_v58 }
  0x56   :  { %v102_v63 = vsel %vm98_vm3, %v96_v55, %v100_v61  ;;  %v103_v2 = vsub.f32 %v47_v29, %v101_v62 }
  0x57   :  { %v104_v4 = vsub.f32 %v48_v33, %v102_v63 }
  0x58   :  { %v105_v6 = vmul.f32 %v103_v2, %v103_v2 }
  0x59   :  { %v106_v7 = vmul.f32 %v104_v4, %v104_v4 }
  0x5a   :  { %v119_v10 = vmul.f32 %v117_v3, %v105_v6 }
  0x5b   :  { %v120_v11 = vmul.f32 %v118_v5, %v106_v7 }
  0x5d   :  { %v122_v0 = vadd.f32 %v120_v11, %v119_v10 }
  0x5f   :  { %124 = vst [vmem:[#allocation7] sm:$0xff] %v122_v0 }
  0x60   :  { %214 = shalt.err (!%p211_p6)
}
  0x61   :  { %s215_s10 = scalar_lea.hbm %s313_s2, 128 }
  0x62   :  { %p216_p7 = scmp.ne.s32.totalorder %s313_s2, %s215_s10  ;;  %p219_p8 = scmp.lt.u32.totalorder %s215_s10, %s313_s2 }
  0x64   :  { %p221_p9 = pnand %p219_p8, %p216_p7 }
  0x66   :  { %224 = shalt.err (!%p221_p9)
}
  0x67   :  { %134 = dma.vmem_to_hbm [thread:$0]  %s132_s6, 128, %s313_s2, [#allocation4]  }
  0x68   :  { %229 = dma.done.wait [#allocation4], 128  }
  0x69   :  { %230 = vsyncadd [#allocation4], 4294967168 }
  0x6a   :  { %138 = vsyncpa [#allocation3], 1 }
  0x6b   :  { %139 = vsyncpa [#allocation6], 1 }
  0x6c   :  { %140 = vsyncpa [#allocation4], 1 }

</bundles_post_ra>
